<compile_context>
chip_gen: v7x
topology: tpu7x:2x2x1
jax: 0.10.0
libtpu: 0.0.40
codegen_flags: <defaults>
</compile_context>

<pallas_src>
import numpy as np
import jax
import jax.numpy as jnp
from jax import lax
from jax.experimental import pallas as pl
from jax.experimental.pallas import tpu as pltpu


_ROLL_SIGN = None


def _roll_shift_sign():
    """+1 if pltpu.roll follows jnp.roll's shift convention, -1 if reversed.

    One tiny probe kernel (cached) so the main kernel is robust to either
    rotate-direction convention of the TPU lowering.
    """
    global _ROLL_SIGN
    if _ROLL_SIGN is not None:
        return _ROLL_SIGN

    def probe(x_ref, o_ref):
        o_ref[...] = pltpu.roll(x_ref[...], 3, 1)

    x = jnp.arange(8 * 128, dtype=jnp.float32).reshape(8, 128)
    y = pl.pallas_call(
        probe, out_shape=jax.ShapeDtypeStruct((8, 128), jnp.float32))(x)
    if bool(jnp.array_equal(y, jnp.roll(x, 3, axis=1))):
        _ROLL_SIGN = 1
    elif bool(jnp.array_equal(y, jnp.roll(x, -3, axis=1))):
        _ROLL_SIGN = -1
    else:
        raise RuntimeError("could not determine pltpu.roll shift convention")
    return _ROLL_SIGN


def _make_kernel(nb, C, O, HW, shifts):
    """Builds the fused kernel operating on a (nb*C, HW) input block."""

    def kernel(x_ref, weff_ref, fk_ref, fb_ref, masks_ref, b1_ref, out_ref):
        # x_ref     : (nb*C, HW)  flattened input images               (VMEM)
        # weff_ref  : (C, 9)      pw[c] * shared 3x3 taps              (VMEM)
        # fk_ref    : (O, 9)      final 3x3 conv taps                  (VMEM)
        # fb_ref    : (O, 1)      final conv bias                      (VMEM)
        # masks_ref : (9, HW)     zero-padding halo masks per tap      (VMEM)
        # b1_ref    : (1,)        shared_b*sum(pw) + pw_b              (SMEM)
        # out_ref   : (nb*O, HW)  flattened output images              (VMEM)
        fb = fb_ref[...]                                    # (O, 1)
        bias1 = b1_ref[0]
        for n in range(nb):
            xs = x_ref[n * C:(n + 1) * C, :]                # (C, HW)

            # ---- stage 1+2 fused: shared 3x3 conv, pw folded into taps ----
            acc = jnp.zeros((1, HW), jnp.float32)
            for t in range(9):
                # channel-mix first so the roll acts on a single (1, HW) row
                mix = jnp.sum(xs * weff_ref[:, t:t + 1], axis=0, keepdims=True)
                s = shifts[t]
                if s == 0:                                  # center tap
                    acc = acc + mix
                else:
                    shifted = pltpu.roll(mix, s, axis=1)
                    acc = acc + masks_ref[t:t + 1, :] * shifted
            y = jnp.maximum(acc + bias1, 0.0)               # ReLU, (1, HW)

            # ---- stage 3: final 3x3 conv, 1 -> O channels ----
            r = jnp.zeros((O, HW), jnp.float32)
            for t in range(9):
                s = shifts[t]
                if s == 0:
                    ys = y
                else:
                    ys = masks_ref[t:t + 1, :] * pltpu.roll(y, s, axis=1)
                r = r + fk_ref[:, t:t + 1] * ys             # (O, HW)
            out_ref[n * O:(n + 1) * O, :] = (r + fb).astype(out_ref.dtype)

    return kernel


def shared_channel_conv(x, shared_k, shared_b, pw_w, pw_b, final_k, final_b):
    """x: (N, C, H, W) f32. Returns (N, O, H, W) f32 (channels_aggr='conv')."""
    N, C, H, W = x.shape
    O = final_k.shape[0]
    HW = H * W

    # ---- host-side parameter folding (tiny, done once per call) ----
    w_eff = (pw_w[:, None] * shared_k.reshape(1, 9)).astype(jnp.float32)
    bias1 = (shared_b[0] * jnp.sum(pw_w) + pw_b[0]).reshape(1).astype(jnp.float32)
    fk = final_k.reshape(O, 9).astype(jnp.float32)
    fb = final_b.reshape(O, 1).astype(jnp.float32)

    # ---- halo masks + roll shifts for the 9 taps on the flattened axis ----
    sign = _roll_shift_sign()
    row = np.arange(H)[:, None]
    col = np.arange(W)[None, :]
    mask_list, shifts = [], []
    for dy in (-1, 0, 1):
        for dx in (-1, 0, 1):
            valid = ((row + dy >= 0) & (row + dy < H) &
                     (col + dx >= 0) & (col + dx < W))
            mask_list.append(valid.reshape(-1).astype(np.float32))
            off = dy * W + dx            # flat offset of the source pixel
            shifts.append(((-sign) * off) % HW if off != 0 else 0)
    masks = jnp.asarray(np.stack(mask_list))                # (9, HW)

    # ---- batch blocking: several images per grid step ----
    nb = N if N <= 8 else 8
    n_pad = (-N) % nb
    if n_pad:
        x = jnp.pad(x, ((0, n_pad), (0, 0), (0, 0), (0, 0)))
    Np = N + n_pad
    x2d = x.reshape(Np * C, HW)                             # free reshape

    kernel = _make_kernel(nb, C, O, HW, tuple(shifts))
    out2d = pl.pallas_call(
        kernel,
        out_shape=jax.ShapeDtypeStruct((Np * O, HW), jnp.float32),
        grid=(Np // nb,),
        in_specs=[
            pl.BlockSpec((nb * C, HW), lambda n: (n, 0)),       # x (lane-dense)
            pl.BlockSpec((C, 9), lambda n: (0, 0)),             # w_eff
            pl.BlockSpec((O, 9), lambda n: (0, 0)),             # final taps
            pl.BlockSpec((O, 1), lambda n: (0, 0)),             # final bias
            pl.BlockSpec((9, HW), lambda n: (0, 0)),            # halo masks
            pl.BlockSpec(memory_space=pltpu.MemorySpace.SMEM),  # bias1 scalar
        ],
        out_specs=pl.BlockSpec((nb * O, HW), lambda n: (n, 0)),
        compiler_params=pltpu.CompilerParams(
            dimension_semantics=("parallel",),
            vmem_limit_bytes=32 * 1024 * 1024),
    )(x2d, w_eff, fk, fb, masks, bias1)

    return out2d.reshape(Np, O, H, W)[:N]


def reference_forward(x, shared_k, shared_b, pw_w, pw_b, final_k, final_b):
    """Pure-JAX reference matching the PyTorch module (channels_aggr='conv')."""
    N, C, H, W = x.shape
    O = final_k.shape[0]
    # shared 3x3 conv applied per channel (same weights)
    xr = x.reshape(N * C, 1, H, W)
    o1 = lax.conv_general_dilated(xr, shared_k.reshape(1, 1, 3, 3),
                                  (1, 1), 'SAME') + shared_b[0]
    o1 = o1.reshape(N, C, H, W)
    # 1x1 pointwise conv + ReLU
    p = jnp.einsum('nchw,c->nhw', o1, pw_w) + pw_b[0]
    p = jnp.maximum(p, 0.0)[:, None, :, :]
    # final 3x3 conv
    out = lax.conv_general_dilated(p, final_k.reshape(O, 1, 3, 3),
                                   (1, 1), 'SAME')
    return out + final_b.reshape(1, O, 1, 1)


if __name__ == "__main__":
    N, C, H, W = 2, 4, 16, 16
    O = 4  # out_channels

    key = jax.random.PRNGKey(0)
    k_x, k_sk, k_sb, k_pw, k_pb, k_fk, k_fb = jax.random.split(key, 7)

    x = jax.random.normal(k_x, (N, C, H, W), jnp.float32)
    shared_k = 0.3 * jax.random.normal(k_sk, (3, 3), jnp.float32)
    shared_b = 0.1 * jax.random.normal(k_sb, (1,), jnp.float32)
    pw_w = 0.5 * jax.random.normal(k_pw, (C,), jnp.float32)
    pw_b = 0.1 * jax.random.normal(k_pb, (1,), jnp.float32)
    final_k = 0.3 * jax.random.normal(k_fk, (O, 3, 3), jnp.float32)
    final_b = 0.1 * jax.random.normal(k_fb, (O,), jnp.float32)

    out = shared_channel_conv(x, shared_k, shared_b, pw_w, pw_b,
                              final_k, final_b)
    out = jax.block_until_ready(out)

    ref = reference_forward(x, shared_k, shared_b, pw_w, pw_b,
                            final_k, final_b)
    np.testing.assert_allclose(np.asarray(out), np.asarray(ref),
                               rtol=1e-4, atol=1e-4)
    print("KERNEL_OK")
</pallas_src>

<mosaic_0001>
module attributes {stable_mosaic.version = 11 : i64} {
  func.func @probe(%arg0: memref<8x128xf32, #tpu.memory_space<vmem>>, %arg1: memref<8x128xf32, #tpu.memory_space<vmem>>) attributes {dimension_semantics = [], scalar_prefetch = 0 : i64, scratch_operands = 0 : i64, tpu.core_type = #tpu.core_type<tc>} {
    %c0 = arith.constant 0 : index
    %c0_0 = arith.constant 0 : index
    %0 = vector.load %arg0[%c0, %c0_0] : memref<8x128xf32, #tpu.memory_space<vmem>>, vector<8x128xf32>
    %c3_i32 = arith.constant 3 : i32
    %1 = tpu.dynamic_rotate %0 by %c3_i32 dim 1 : vector<8x128xf32>, i32 -> vector<8x128xf32>
    %c0_1 = arith.constant 0 : index
    %c0_2 = arith.constant 0 : index
    %2 = vector.load %arg1[%c0_1, %c0_2] : memref<8x128xf32, #tpu.memory_space<vmem>>, vector<8x128xf32>
    tpu.vector_store %arg1[%c0_1, %c0_2], %1 {strides = array<i32>} : memref<8x128xf32, #tpu.memory_space<vmem>>, vector<8x128xf32>,
    return
  }
}

</mosaic_0001>

<bundles_post_ra>
// kernel: tpu_custom_call.1
= control target key start
LH: loop header
LB: loop body
LE: loop exit
PB: predicated region body
PF: predicated region fallthrough
CT: control target
= control target key end

     0   :  { %6 = vsyncpa [#allocation3], 0  ;;  %s128_s0 = inlined_call_operand.hbm [shape: f32[8,128], index: 0, kind: input, shape index: {}]   ;;  %s129_s1 = inlined_call_operand.hbm [shape: f32[8,128], index: 1, kind: output, shape index: {}]  }
   0x1   :  { %7 = vsyncpa [#allocation4], 0  ;;  %s91_s6 = smov [#allocation2]   ;;  %s43_s10 = scalar_lea.hbm %s128_s0, 128 }
   0x2   :  { %s14_s7 = sshll.u32 %s91_s6, 4  ;;  %p44_p0 = scmp.ne.s32.totalorder %s128_s0, %s43_s10  ;;  %s15_s7 = int_to_ptr.vmem [resolvable:$true] %s14_s7 }
   0x3   :  { %p47_p1 = scmp.lt.u32.totalorder %s43_s10, %s128_s0 }
   0x5   :  { %p49_p2 = pnand %p47_p1, %p44_p0 }
   0x7   :  { %52 = shalt.err (!%p49_p2)
}
   0x8   :  { %s53_s15 = scalar_lea.vmem %s15_s7, 128  ;;  %p58_p4 = scmp.lt.s32.totalorder %s15_s7, %s15_s7 }
   0x9   :  { %p54_p3 = scmp.ne.s32.totalorder %s15_s7, %s53_s15  ;;  %p59_p5 = scmp.lt.s32.totalorder %s53_s15, %s53_s15 }
   0xb   :  { %p60_p6 = por %p59_p5, %p58_p4 }
   0xd   :  { %p61_p7 = pnand %p60_p6, %p54_p3 }
   0xf   :  { %64 = shalt.err (!%p61_p7)
}
  0x10   :  { %17 = dma.hbm_to_vmem [thread:$0]  %s128_s0, 128, %s15_s7, [#allocation3]  }
  0x11   :  { %87 = dma.done.wait [#allocation3], 128  }
  0x12   :  { %88 = vsyncadd [#allocation3], 4294967168  ;;  %v21_v0 = vld [vmem:[#allocation2] sm:$0xff]  ;;  %s92_s18 = smov 3   ;;  %s93_s19 = smov [#allocation5]  }
  0x13   :  { %22 = vrot.lane.b32.xlu0 %v21_v0, %s92_s18  ;;  %s31_s20 = sshll.u32 %s93_s19, 4  ;;  %s32_s20 = int_to_ptr.vmem [resolvable:$true] %s31_s20 }
  0x14   :  { %s65_s21 = scalar_lea.vmem %s32_s20, 128  ;;  %p70_p9 = scmp.lt.s32.totalorder %s32_s20, %s32_s20 }
  0x15   :  { %p66_p8 = scmp.ne.s32.totalorder %s32_s20, %s65_s21  ;;  %p71_p10 = scmp.lt.s32.totalorder %s65_s21, %s65_s21 }
  0x17   :  { %p72_p11 = por %p71_p10, %p70_p9 }
  0x19   :  { %p73_p12 = pnand %p72_p11, %p66_p8 }
  0x85   :  { %v23_v1 = vpop.permute.xlu0 %22 }
  0x86   :  { %24 = vst [vmem:[#allocation5] sm:$0xff] %v23_v1 }
  0x87   :  { %76 = shalt.err (!%p73_p12)
}
  0x88   :  { %s77_s0 = scalar_lea.hbm %s129_s1, 128 }
  0x89   :  { %p78_p13 = scmp.ne.s32.totalorder %s129_s1, %s77_s0  ;;  %p81_p0 = scmp.lt.u32.totalorder %s77_s0, %s129_s1 }
  0x8b   :  { %p83_p1 = pnand %p81_p0, %p78_p13 }
  0x8d   :  { %86 = shalt.err (!%p83_p1)
}
  0x8e   :  { %34 = dma.vmem_to_hbm [thread:$0]  %s32_s20, 128, %s129_s1, [#allocation4]  }
  0x8f   :  { %89 = dma.done.wait [#allocation4], 128  }
  0x90   :  { %90 = vsyncadd [#allocation4], 4294967168 }
  0x91   :  { %38 = vsyncpa [#allocation3], 1 }
  0x92   :  { %39 = vsyncpa [#allocation4], 1 }

</bundles_post_ra>
